<compile_context>
chip_gen: v7x
topology: tpu7x:2x2x1
jax: 0.10.0
libtpu: 0.0.40
codegen_flags: <defaults>
</compile_context>

<pallas_src>
import jax
import jax.numpy as jnp
from jax.experimental import pallas as pl
from jax.experimental.pallas import tpu as pltpu

_EPS = 1e-5


def _round_up(x, m):
    return (x + m - 1) // m * m


def _vmem_limit_bytes():
    """Generation-aware scoped-VMEM budget: ~half of physical VMEM."""
    try:
        cap = int(pltpu.get_tpu_info().vmem_capacity_bytes)
    except Exception:  # interpret mode / unknown chip
        cap = 64 * 1024 * 1024
    return max(16 * 1024 * 1024, min(cap // 2, 96 * 1024 * 1024, cap))


def _compiler_params(vmem_limit):
    return pltpu.CompilerParams(
        dimension_semantics=("parallel",),    # M tiles are fully independent
        vmem_limit_bytes=vmem_limit,
    )


def _lane_chunk(tile_m, k_rows):
    """Lane-chunk for the GEMM epilogue so live f32 temporaries stay bounded."""
    limit = max(128, ((1 << 18) // max(k_rows, 1)) // 128 * 128)
    best = 128
    for c in range(128, tile_m + 1, 128):
        if tile_m % c == 0 and c <= limit:
            best = c
    return min(best, tile_m)


def _pick_elem_tile(mp, base_tm, target=2048):
    """Largest multiple of base_tm that divides mp and is <= target (bigger tiles
    for the purely memory-bound elementwise pass)."""
    n = mp // base_tm
    best = base_tm
    for k in range(1, n + 1):
        if n % k == 0 and k * base_tm <= target:
            best = k * base_tm
    return best


# ------------------------------------------------------------------ glue: im2col
def _im2col_cm(x_cm, stride):
    """Channel-major im2col for a 3x3 / pad=1 conv (bf16 in -> bf16 out).

    x_cm: (C, N, H, W) -> (9*C, N*OH*OW), row index = (kh*3 + kw)*C + c.
    TODO(synk): replace with in-kernel halo/flat-shift windows (review item 1).
    """
    C, N, H, W = x_cm.shape
    OH = (H + 2 - 3) // stride + 1
    OW = (W + 2 - 3) // stride + 1
    xp = jnp.pad(x_cm, ((0, 0), (0, 0), (1, 1), (1, 1)))
    taps = []
    for kh in range(3):
        for kw in range(3):
            p = xp[:, :, kh:kh + stride * (OH - 1) + 1:stride,
                         kw:kw + stride * (OW - 1) + 1:stride]
            taps.append(p.reshape(C, N * OH * OW))
    return jnp.concatenate(taps, axis=0), (N, OH, OW)


def _conv2_tap_mask(N, OH, OW, M, Mp):
    """(9, Mp) f32 mask: 1 where tap (kh,kw) reads a valid (non-padding) pixel of
    the stride-1 conv2 input AND the flat column is < M (real data, not tail pad)."""
    m = jnp.arange(Mp, dtype=jnp.int32)
    ow = m % OW
    oh = (m // OW) % OH
    in_range = m < M
    rows = []
    for kh in range(3):
        for kw in range(3):
            ih = oh + (kh - 1)
            iw = ow + (kw - 1)
            v = (ih >= 0) & (ih < OH) & (iw >= 0) & (iw < OW) & in_range
            rows.append(v)
    return jnp.stack(rows, axis=0).astype(jnp.float32)


# ------------------------------------------------------------------ kernel A / C
def conv_gemm_stats(xt, wt, tile_m, vmem_limit, xs=None, ws=None,
                    pre_scale=None, pre_shift=None, pre_mask=None):
    """Per-M-tile GEMM y = W @ X with fused extras.

    xt : (K, Mp)   bf16 im2col slab (K = 9*Cin), M on lanes.
    wt : (Cout, K) bf16 folded conv weights.
    Optional fused pieces:
      * xs/ws          : 1x1 projection shortcut GEMM s = ws @ xs (bf16).
      * pre_scale/shift: (K, 1) f32 per-row BN1 affine applied to X before the
                         matmul, followed by ReLU (review: fold BN1+ReLU1 into
                         conv2's operand load -- standalone kernel B eliminated).
      * pre_mask       : (9, Mp) f32 tap-validity mask; zeroes the conv2 spatial
                         padding border and the ragged M tail *after* the affine.
    Outputs: y (bf16), per-tile sum / sum-of-squares (f32) for BatchNorm;
             ditto for the projection branch when present.
    """
    K, Mp = xt.shape
    Cout = wt.shape[0]
    n_tiles = Mp // tile_m
    has_proj = xs is not None
    has_pre = pre_scale is not None
    cpt = K // 9                       # channels per tap (only used with pre_mask)
    chunk = _lane_chunk(tile_m, K)
    n_chunks = tile_m // chunk

    def kernel(*refs):
        pos = 2
        x_ref, w_ref = refs[0], refs[1]
        if has_pre:
            psc_ref, psh_ref, msk_ref = refs[pos], refs[pos + 1], refs[pos + 2]
            pos += 3
        if has_proj:
            xs_ref, ws_ref = refs[pos], refs[pos + 1]
            pos += 2
        if has_proj:
            y_ref, ysum_ref, ysq_ref, s_ref, ssum_ref, ssq_ref = refs[pos:]
        else:
            y_ref, ysum_ref, ysq_ref = refs[pos:]

        w = w_ref[...]
        if has_pre:
            psc = psc_ref[...]
            psh = psh_ref[...]
        if has_proj:
            wsv = ws_ref[...]

        ysum = jnp.zeros((Cout, 1), jnp.float32)
        ysq = jnp.zeros((Cout, 1), jnp.float32)
        if has_proj:
            ssum = jnp.zeros((Cout, 1), jnp.float32)
            ssq = jnp.zeros((Cout, 1), jnp.float32)

        # Lane-chunked epilogue: bounds the live f32 (Cout, chunk) tile and the
        # pre-activation temporaries (review: vreg/VMEM pressure, v5e spills).
        for c in range(n_chunks):
            lo = c * chunk
            xb = x_ref[:, lo:lo + chunk]
            if has_pre:
                # BN1-as-affine + ReLU on the slab rows (f32), then the per-tap
                # validity mask so padding/tail columns stay exactly zero.
                xa = jnp.maximum(xb.astype(jnp.float32) * psc + psh, 0.0)
                mblk = msk_ref[:, lo:lo + chunk]                      # (9, chunk)
                row = jax.lax.broadcasted_iota(jnp.int32, (K, chunk), 0)
                mfull = jnp.zeros((K, chunk), jnp.float32)
                for t in range(9):
                    sel = (row >= t * cpt) & (row < (t + 1) * cpt)
                    mfull = mfull + sel.astype(jnp.float32) * mblk[t:t + 1, :]
                xb = (xa * mfull).astype(jnp.bfloat16)
            y = jnp.dot(w, xb, preferred_element_type=jnp.float32)
            y_ref[:, lo:lo + chunk] = y.astype(y_ref.dtype)
            ysum = ysum + jnp.sum(y, axis=1, keepdims=True)
            ysq = ysq + jnp.sum(y * y, axis=1, keepdims=True)
            if has_proj:
                s = jnp.dot(wsv, xs_ref[:, lo:lo + chunk],
                            preferred_element_type=jnp.float32)
                s_ref[:, lo:lo + chunk] = s.astype(s_ref.dtype)
                ssum = ssum + jnp.sum(s, axis=1, keepdims=True)
                ssq = ssq + jnp.sum(s * s, axis=1, keepdims=True)

        # NOTE(review, stats layout): per-tile (Cout, 1) stat stores are masked
        # vst's, but they are a 1/TILE_M fraction of the activation traffic; kept
        # in this layout for lowering robustness at small Cout.
        ysum_ref[...] = ysum[None]
        ysq_ref[...] = ysq[None]
        if has_proj:
            ssum_ref[...] = ssum[None]
            ssq_ref[...] = ssq[None]

    act_out_spec = pl.BlockSpec((Cout, tile_m), lambda i: (0, i))
    stat_spec = pl.BlockSpec((1, Cout, 1), lambda i: (i, 0, 0))
    stat_shape = jax.ShapeDtypeStruct((n_tiles, Cout, 1), jnp.float32)
    col_k_spec = pl.BlockSpec((K, 1), lambda i: (0, 0))

    # TODO(synk): on v7x, wrap the constant-index weight specs below with
    #             pipeline_mode=pl.Buffered(1) to reclaim the double-buffer VMEM.
    in_specs = [pl.BlockSpec((K, tile_m), lambda i: (0, i)),
                pl.BlockSpec((Cout, K), lambda i: (0, 0))]
    inputs = [xt, wt]
    if has_pre:
        in_specs += [col_k_spec, col_k_spec,
                     pl.BlockSpec((9, tile_m), lambda i: (0, i))]
        inputs += [pre_scale, pre_shift, pre_mask]
    if has_proj:
        cin_s = xs.shape[0]
        in_specs += [pl.BlockSpec((cin_s, tile_m), lambda i: (0, i)),
                     pl.BlockSpec((Cout, cin_s), lambda i: (0, 0))]
        inputs += [xs, ws]

    out_shapes = [jax.ShapeDtypeStruct((Cout, Mp), jnp.bfloat16),
                  stat_shape, stat_shape]
    out_specs = [act_out_spec, stat_spec, stat_spec]
    if has_proj:
        out_shapes += [jax.ShapeDtypeStruct((Cout, Mp), jnp.bfloat16),
                       stat_shape, stat_shape]
        out_specs += [act_out_spec, stat_spec, stat_spec]

    return pl.pallas_call(
        kernel,
        out_shape=tuple(out_shapes),
        grid_spec=pltpu.PrefetchScalarGridSpec(
            num_scalar_prefetch=0,
            grid=(n_tiles,),
            in_specs=in_specs,
            out_specs=out_specs,
        ),
        compiler_params=_compiler_params(vmem_limit),
    )(*inputs)


# ------------------------------------------------------------------ kernel D
def bn_add_relu(y2, scale2, shift2, shortcut, tile_m, vmem_limit,
                scale_s=None, shift_s=None):
    """out = relu( relu(y2*scale2 + shift2) + shortcut' ) per M-tile.

    shortcut' = relu(shortcut*scale_s + shift_s) when the projection branch has
    its own BN+ReLU (ic != oc), else the raw identity shortcut.
    y2 / shortcut arrive as bf16; the affine math runs in f32.
    """
    C, Mp = y2.shape
    n_tiles = Mp // tile_m
    has_proj = scale_s is not None

    def kernel(*refs):
        if has_proj:
            y_ref, sc_ref, sh_ref, s_ref, scs_ref, shs_ref, o_ref = refs
        else:
            y_ref, sc_ref, sh_ref, s_ref, o_ref = refs
        y = jnp.maximum(
            y_ref[...].astype(jnp.float32) * sc_ref[...] + sh_ref[...], 0.0)
        s = s_ref[...].astype(jnp.float32)
        if has_proj:
            s = jnp.maximum(s * scs_ref[...] + shs_ref[...], 0.0)
        # TODO(synk): emit bf16 here if the downstream consumer tolerates it
        #             (review item 12); kept f32 to match the module's dtype.
        o_ref[...] = jnp.maximum(y + s, 0.0)

    act_spec = pl.BlockSpec((C, tile_m), lambda i: (0, i))
    col_spec = pl.BlockSpec((C, 1), lambda i: (0, 0))
    in_specs = [act_spec, col_spec, col_spec, act_spec]
    inputs = [y2, scale2, shift2, shortcut]
    if has_proj:
        in_specs += [col_spec, col_spec]
        inputs += [scale_s, shift_s]

    return pl.pallas_call(
        kernel,
        out_shape=jax.ShapeDtypeStruct((C, Mp), jnp.float32),
        grid_spec=pltpu.PrefetchScalarGridSpec(
            num_scalar_prefetch=0,
            grid=(n_tiles,),
            in_specs=in_specs,
            out_specs=act_spec,
        ),
        compiler_params=_compiler_params(vmem_limit),
    )(*inputs)


# ------------------------------------------------------------------ glue: BN reduce
def _bn_affine(ysum, ysq, m_true, gamma, beta, eps=_EPS):
    """Reduce per-tile stats -> per-channel (scale, shift) columns for y*scale+shift.

    NOTE(review): E[x^2]-mean^2 in f32 can cancel for channels with large means;
    clamped at 0 and acceptable at these scales.  TODO(synk): compensated/two-pass
    reduction if activations grow.
    """
    mean = jnp.sum(ysum, axis=0)[:, 0] / m_true
    ex2 = jnp.sum(ysq, axis=0)[:, 0] / m_true
    var = jnp.maximum(ex2 - mean * mean, 0.0)        # biased variance (PyTorch fwd)
    scale = gamma * jax.lax.rsqrt(var + eps)
    shift = beta - mean * scale
    return scale[:, None].astype(jnp.float32), shift[:, None].astype(jnp.float32)


# ------------------------------------------------------------------ forward
def resblock_pallas(x_nchw, params, ic, oc, tile_m=512):
    stride = 1 if ic == oc else 2
    has_proj = ic != oc

    x_cm = jnp.transpose(x_nchw, (1, 0, 2, 3))                       # (ic, N, H, W)
    x_bf = x_cm.astype(jnp.bfloat16)          # cast once, BEFORE the 9-tap im2col
    _, N, H, W = x_cm.shape

    # ---- conv1 operands (taps folded into the contraction dim, bf16 slab) ----
    X1t, (_, OH, OW) = _im2col_cm(x_bf, stride)                      # (9*ic, M) bf16
    M = N * OH * OW

    # Tile choice: lane-dense; prefer >=2 / an even number of tiles so the two
    # v7x TensorCores both get work ("parallel" grid axis).
    tile_m = _round_up(tile_m, 128)
    TM = min(tile_m, _round_up(M, 128))
    if _round_up(M, TM) // TM == 1 and TM > 128:
        TM = max(128, _round_up(TM // 2, 128))
    Mp = _round_up(M, TM)
    if (Mp // TM) > 1 and (Mp // TM) % 2 == 1 and TM > 128:
        TM = max(128, _round_up(TM // 2, 128))
        Mp = _round_up(M, TM)
    pad = Mp - M

    X1t = jnp.pad(X1t, ((0, 0), (0, pad)))
    w1t = jnp.transpose(params["w1"], (3, 0, 1, 2)).reshape(oc, 9 * ic).astype(jnp.bfloat16)
    w2t = jnp.transpose(params["w2"], (3, 0, 1, 2)).reshape(oc, 9 * oc).astype(jnp.bfloat16)
    # NOTE: conv biases b1/b2/bs are intentionally omitted inside the kernels --
    # a per-channel constant added before BatchNorm mean subtraction cancels exactly.

    g1, be1 = params["g1"].reshape(oc), params["be1"].reshape(oc)
    g2, be2 = params["g2"].reshape(oc), params["be2"].reshape(oc)

    vmem_limit = _vmem_limit_bytes()

    # ---- kernel A: conv1 GEMM (+ fused 1x1 projection GEMM) + partial BN stats ----
    if has_proj:
        xs = x_bf[:, :, ::stride, ::stride].reshape(ic, M)
        xs = jnp.pad(xs, ((0, 0), (0, pad)))
        wst = params["ws"].reshape(ic, oc).T.astype(jnp.bfloat16)
        (y1raw, y1sum, y1sq, sraw, ssum, ssq) = conv_gemm_stats(
            X1t, w1t, TM, vmem_limit, xs=xs, ws=wst)
        gs, bes = params["gs"].reshape(oc), params["bes"].reshape(oc)
        scale_s, shift_s = _bn_affine(ssum, ssq, M, gs, bes)
        shortcut = sraw                                              # bf16
    else:
        y1raw, y1sum, y1sq = conv_gemm_stats(X1t, w1t, TM, vmem_limit)
        shortcut = jnp.pad(x_bf.reshape(ic, M), ((0, 0), (0, pad)))  # identity, bf16
        scale_s = shift_s = None

    # ---- conv2: BN1+ReLU1 folded into the GEMM operand load (kernel B removed) ----
    scale1, shift1 = _bn_affine(y1sum, y1sq, M, g1, be1)
    y1_cm = y1raw[:, :M].reshape(oc, N, OH, OW)                      # raw conv1 out, bf16
    X2t, _ = _im2col_cm(y1_cm, 1)                                    # (9*oc, M) bf16
    X2t = jnp.pad(X2t, ((0, 0), (0, pad)))
    pre_scale = jnp.tile(scale1, (9, 1))                             # (9*oc, 1) f32
    pre_shift = jnp.tile(shift1, (9, 1))
    tap_mask = _conv2_tap_mask(N, OH, OW, M, Mp)                     # (9, Mp) f32

    # ---- kernel C: conv2 GEMM with in-kernel BN1+ReLU1 + partial BN2 stats ----
    y2raw, y2sum, y2sq = conv_gemm_stats(
        X2t, w2t, TM, vmem_limit,
        pre_scale=pre_scale, pre_shift=pre_shift, pre_mask=tap_mask)
    scale2, shift2 = _bn_affine(y2sum, y2sq, M, g2, be2)

    # ---- kernel D: BN2 + ReLU2 + shortcut (BN+ReLU if projection) + final ReLU ----
    TM_D = _pick_elem_tile(Mp, TM)            # bigger tile for the mem-bound pass
    out_t = bn_add_relu(y2raw, scale2, shift2, shortcut, TM_D, vmem_limit,
                        scale_s, shift_s)

    out = out_t[:, :M].reshape(oc, N, OH, OW)
    return jnp.transpose(out, (1, 0, 2, 3))                          # back to NCHW


# ------------------------------------------------------------------ reference
def resblock_ref(x_nchw, params, ic, oc):
    stride = 1 if ic == oc else 2
    x = jnp.transpose(x_nchw, (0, 2, 3, 1)).astype(jnp.float32)
    dn = ("NHWC", "HWIO", "NHWC")
    hi = jax.lax.Precision.HIGHEST

    def bn_relu(y, g, b, eps=_EPS):
        mu = jnp.mean(y, axis=(0, 1, 2), keepdims=True)
        var = jnp.mean((y - mu) ** 2, axis=(0, 1, 2), keepdims=True)
        return jnp.maximum((y - mu) / jnp.sqrt(var + eps) * g + b, 0.0)

    y = jax.lax.conv_general_dilated(x, params["w1"], (stride, stride), ((1, 1), (1, 1)),
                                     dimension_numbers=dn, precision=hi) + params["b1"]
    y = bn_relu(y, params["g1"], params["be1"])
    y = jax.lax.conv_general_dilated(y, params["w2"], (1, 1), ((1, 1), (1, 1)),
                                     dimension_numbers=dn, precision=hi) + params["b2"]
    y = bn_relu(y, params["g2"], params["be2"])
    if ic != oc:
        s = jax.lax.conv_general_dilated(x, params["ws"], (stride, stride), ((0, 0), (0, 0)),
                                         dimension_numbers=dn, precision=hi) + params["bs"]
        s = bn_relu(s, params["gs"], params["bes"])
    else:
        s = x
    return jnp.transpose(jnp.maximum(y + s, 0.0), (0, 3, 1, 2))


# ------------------------------------------------------------------ params
def init_params(key, ic, oc):
    keys = iter(jax.random.split(key, 16))

    def nrm(shape, scale=0.1):
        return scale * jax.random.normal(next(keys), shape, jnp.float32)

    p = dict(
        w1=nrm((3, 3, ic, oc)), b1=nrm((oc,)), g1=1.0 + nrm((oc,)), be1=nrm((oc,)),
        w2=nrm((3, 3, oc, oc)), b2=nrm((oc,)), g2=1.0 + nrm((oc,)), be2=nrm((oc,)),
    )
    if ic != oc:
        p.update(ws=nrm((1, 1, ic, oc)), bs=nrm((oc,)),
                 gs=1.0 + nrm((oc,)), bes=nrm((oc,)))
    return p


# ------------------------------------------------------------------ main
if __name__ == "__main__":
    root = jax.random.PRNGKey(0)
    kx, kp = jax.random.split(root)

    # (ic != oc): stride-2 conv + projection shortcut; (ic == oc): identity path.
    for (ic, oc) in [(4, 8), (4, 4)]:
        sub = ic * 100 + oc
        x = jax.random.normal(jax.random.fold_in(kx, sub), (2, ic, 16, 16), jnp.float32)
        params = init_params(jax.random.fold_in(kp, sub), ic, oc)

        # tile_m=128 exercises the multi-tile grid, the cross-tile BN reduction and
        # the in-kernel BN1+ReLU1 + tap-mask path on the identity case
        # (M = 2*16*16 = 512 -> 4 GEMM tiles, 1 larger elementwise tile).
        out = resblock_pallas(x, params, ic, oc, tile_m=128)
        out = jax.block_until_ready(out)

        ref = resblock_ref(x, params, ic, oc)
        assert out.shape == ref.shape, (out.shape, ref.shape)
        err = float(jnp.max(jnp.abs(out - ref)))
        # Kernel uses bf16 matmul inputs and bf16 inter-kernel intermediates
        # (f32 accumulation + f32 BN stats); reference is all-f32 HIGHEST, so use
        # a mixed-precision tolerance.
        tol = 4e-2 * (1.0 + float(jnp.max(jnp.abs(ref))))
        if err > tol:
            raise AssertionError(f"mismatch for ic={ic}, oc={oc}: max abs err {err} > {tol}")

    print("KERNEL_OK")
</pallas_src>

<mosaic_0001>
module attributes {stable_mosaic.version = 11 : i64} {
  func.func @kernel(%arg0: i32, %arg1: memref<36x128xbf16, #tpu.memory_space<vmem>>, %arg2: memref<8x36xbf16, #tpu.memory_space<vmem>>, %arg3: memref<4x128xbf16, #tpu.memory_space<vmem>>, %arg4: memref<8x4xbf16, #tpu.memory_space<vmem>>, %arg5: memref<8x128xbf16, #tpu.memory_space<vmem>>, %arg6: memref<1x8x1xf32, #tpu.memory_space<vmem>>, %arg7: memref<1x8x1xf32, #tpu.memory_space<vmem>>, %arg8: memref<8x128xbf16, #tpu.memory_space<vmem>>, %arg9: memref<1x8x1xf32, #tpu.memory_space<vmem>>, %arg10: memref<1x8x1xf32, #tpu.memory_space<vmem>>) attributes {dimension_semantics = [#tpu.dimension_semantics<parallel>], iteration_bounds = array<i64: 1>, scalar_prefetch = 0 : i64, scratch_operands = 0 : i64, tpu.core_type = #tpu.core_type<tc>, window_params = [{transform_indices = @transform_0, window_bounds = array<i64: 36, 128>}, {pipeline_mode = #tpu.pipeline_mode<synchronous>, transform_indices = @transform_1, window_bounds = array<i64: 8, 36>}, {transform_indices = @transform_2, window_bounds = array<i64: 4, 128>}, {pipeline_mode = #tpu.pipeline_mode<synchronous>, transform_indices = @transform_3, window_bounds = array<i64: 8, 4>}, {transform_indices = @transform_4, window_bounds = array<i64: 8, 128>}, {transform_indices = @transform_5, window_bounds = array<i64: 1, 8, 1>}, {transform_indices = @transform_6, window_bounds = array<i64: 1, 8, 1>}, {transform_indices = @transform_7, window_bounds = array<i64: 8, 128>}, {transform_indices = @transform_8, window_bounds = array<i64: 1, 8, 1>}, {transform_indices = @transform_9, window_bounds = array<i64: 1, 8, 1>}]} {
    %c0 = arith.constant 0 : index
    %c0_0 = arith.constant 0 : index
    %0 = vector.load %arg2[%c0, %c0_0] : memref<8x36xbf16, #tpu.memory_space<vmem>>, vector<8x36xbf16>
    %c0_1 = arith.constant 0 : index
    %c0_2 = arith.constant 0 : index
    %1 = vector.load %arg4[%c0_1, %c0_2] : memref<8x4xbf16, #tpu.memory_space<vmem>>, vector<8x4xbf16>
    %cst = arith.constant 0.000000e+00 : f32
    %2 = vector.broadcast %cst : f32 to vector<8x1xf32>
    %cst_3 = arith.constant 0.000000e+00 : f32
    %3 = vector.broadcast %cst_3 : f32 to vector<8x1xf32>
    %cst_4 = arith.constant 0.000000e+00 : f32
    %4 = vector.broadcast %cst_4 : f32 to vector<8x1xf32>
    %cst_5 = arith.constant 0.000000e+00 : f32
    %5 = vector.broadcast %cst_5 : f32 to vector<8x1xf32>
    %c0_6 = arith.constant 0 : index
    %c0_7 = arith.constant 0 : index
    %6 = vector.load %arg1[%c0_6, %c0_7] : memref<36x128xbf16, #tpu.memory_space<vmem>>, vector<36x128xbf16>
    %cst_8 = arith.constant dense<0.000000e+00> : vector<8x128xf32>
    %7 = tpu.matmul %0, %6, %cst_8 {dimension_numbers = #tpu.dot_dimension_numbers<[1], [0], [0], [1], [0, 0, 1, 1], [], []>} : vector<8x36xbf16>, vector<36x128xbf16>, vector<8x128xf32> -> vector<8x128xf32>
    %8 = arith.truncf %7 : vector<8x128xf32> to vector<8x128xbf16>
    %c0_9 = arith.constant 0 : index
    %c0_10 = arith.constant 0 : index
    %9 = vector.load %arg5[%c0_9, %c0_10] : memref<8x128xbf16, #tpu.memory_space<vmem>>, vector<8x128xbf16>
    tpu.vector_store %arg5[%c0_9, %c0_10], %8 {strides = array<i32>} : memref<8x128xbf16, #tpu.memory_space<vmem>>, vector<8x128xbf16>,
    %cst_11 = arith.constant dense<0.000000e+00> : vector<8xf32>
    %10 = vector.multi_reduction <add>, %7, %cst_11 [1] : vector<8x128xf32> to vector<8xf32>
    %11 = vector.shape_cast %10 : vector<8xf32> to vector<8x1xf32>
    %12 = arith.addf %2, %11 : vector<8x1xf32>
    %13 = arith.mulf %7, %7 : vector<8x128xf32>
    %cst_12 = arith.constant dense<0.000000e+00> : vector<8xf32>
    %14 = vector.multi_reduction <add>, %13, %cst_12 [1] : vector<8x128xf32> to vector<8xf32>
    %15 = vector.shape_cast %14 : vector<8xf32> to vector<8x1xf32>
    %16 = arith.addf %3, %15 : vector<8x1xf32>
    %c0_13 = arith.constant 0 : index
    %c0_14 = arith.constant 0 : index
    %17 = vector.load %arg3[%c0_13, %c0_14] : memref<4x128xbf16, #tpu.memory_space<vmem>>, vector<4x128xbf16>
    %cst_15 = arith.constant dense<0.000000e+00> : vector<8x128xf32>
    %18 = tpu.matmul %1, %17, %cst_15 {dimension_numbers = #tpu.dot_dimension_numbers<[1], [0], [0], [1], [0, 0, 1, 1], [], []>} : vector<8x4xbf16>, vector<4x128xbf16>, vector<8x128xf32> -> vector<8x128xf32>
    %19 = arith.truncf %18 : vector<8x128xf32> to vector<8x128xbf16>
    %c0_16 = arith.constant 0 : index
    %c0_17 = arith.constant 0 : index
    %20 = vector.load %arg8[%c0_16, %c0_17] : memref<8x128xbf16, #tpu.memory_space<vmem>>, vector<8x128xbf16>
    tpu.vector_store %arg8[%c0_16, %c0_17], %19 {strides = array<i32>} : memref<8x128xbf16, #tpu.memory_space<vmem>>, vector<8x128xbf16>,
    %cst_18 = arith.constant dense<0.000000e+00> : vector<8xf32>
    %21 = vector.multi_reduction <add>, %18, %cst_18 [1] : vector<8x128xf32> to vector<8xf32>
    %22 = vector.shape_cast %21 : vector<8xf32> to vector<8x1xf32>
    %23 = arith.addf %4, %22 : vector<8x1xf32>
    %24 = arith.mulf %18, %18 : vector<8x128xf32>
    %cst_19 = arith.constant dense<0.000000e+00> : vector<8xf32>
    %25 = vector.multi_reduction <add>, %24, %cst_19 [1] : vector<8x128xf32> to vector<8xf32>
    %26 = vector.shape_cast %25 : vector<8xf32> to vector<8x1xf32>
    %27 = arith.addf %5, %26 : vector<8x1xf32>
    %28 = vector.shape_cast %12 : vector<8x1xf32> to vector<1x8x1xf32>
    %c0_20 = arith.constant 0 : index
    %c0_21 = arith.constant 0 : index
    %c0_22 = arith.constant 0 : index
    %29 = vector.load %arg6[%c0_20, %c0_21, %c0_22] : memref<1x8x1xf32, #tpu.memory_space<vmem>>, vector<1x8x1xf32>
    tpu.vector_store %arg6[%c0_20, %c0_21, %c0_22], %28 {strides = array<i32>} : memref<1x8x1xf32, #tpu.memory_space<vmem>>, vector<1x8x1xf32>,
    %30 = vector.shape_cast %16 : vector<8x1xf32> to vector<1x8x1xf32>
    %c0_23 = arith.constant 0 : index
    %c0_24 = arith.constant 0 : index
    %c0_25 = arith.constant 0 : index
    %31 = vector.load %arg7[%c0_23, %c0_24, %c0_25] : memref<1x8x1xf32, #tpu.memory_space<vmem>>, vector<1x8x1xf32>
    tpu.vector_store %arg7[%c0_23, %c0_24, %c0_25], %30 {strides = array<i32>} : memref<1x8x1xf32, #tpu.memory_space<vmem>>, vector<1x8x1xf32>,
    %32 = vector.shape_cast %23 : vector<8x1xf32> to vector<1x8x1xf32>
    %c0_26 = arith.constant 0 : index
    %c0_27 = arith.constant 0 : index
    %c0_28 = arith.constant 0 : index
    %33 = vector.load %arg9[%c0_26, %c0_27, %c0_28] : memref<1x8x1xf32, #tpu.memory_space<vmem>>, vector<1x8x1xf32>
    tpu.vector_store %arg9[%c0_26, %c0_27, %c0_28], %32 {strides = array<i32>} : memref<1x8x1xf32, #tpu.memory_space<vmem>>, vector<1x8x1xf32>,
    %34 = vector.shape_cast %27 : vector<8x1xf32> to vector<1x8x1xf32>
    %c0_29 = arith.constant 0 : index
    %c0_30 = arith.constant 0 : index
    %c0_31 = arith.constant 0 : index
    %35 = vector.load %arg10[%c0_29, %c0_30, %c0_31] : memref<1x8x1xf32, #tpu.memory_space<vmem>>, vector<1x8x1xf32>
    tpu.vector_store %arg10[%c0_29, %c0_30, %c0_31], %34 {strides = array<i32>} : memref<1x8x1xf32, #tpu.memory_space<vmem>>, vector<1x8x1xf32>,
    return
  }
  func.func @transform_0(%arg0: i32) -> (i32, i32) {
    %c0_i32 = arith.constant 0 : i32
    %c0_i32_0 = arith.constant 0 : i32
    return %c0_i32, %arg0 : i32, i32
  }
  func.func @transform_1(%arg0: i32) -> (i32, i32) {
    %c0_i32 = arith.constant 0 : i32
    %c0_i32_0 = arith.constant 0 : i32
    %c0_i32_1 = arith.constant 0 : i32
    return %c0_i32, %c0_i32_0 : i32, i32
  }
  func.func @transform_2(%arg0: i32) -> (i32, i32) {
    %c0_i32 = arith.constant 0 : i32
    %c0_i32_0 = arith.constant 0 : i32
    return %c0_i32, %arg0 : i32, i32
  }
  func.func @transform_3(%arg0: i32) -> (i32, i32) {
    %c0_i32 = arith.constant 0 : i32
    %c0_i32_0 = arith.constant 0 : i32
    %c0_i32_1 = arith.constant 0 : i32
    return %c0_i32, %c0_i32_0 : i32, i32
  }
  func.func @transform_4(%arg0: i32) -> (i32, i32) {
    %c0_i32 = arith.constant 0 : i32
    %c0_i32_0 = arith.constant 0 : i32
    return %c0_i32, %arg0 : i32, i32
  }
  func.func @transform_5(%arg0: i32) -> (i32, i32, i32) {
    %c0_i32 = arith.constant 0 : i32
    %c0_i32_0 = arith.constant 0 : i32
    %c0_i32_1 = arith.constant 0 : i32
    return %arg0, %c0_i32, %c0_i32_0 : i32, i32, i32
  }
  func.func @transform_6(%arg0: i32) -> (i32, i32, i32) {
    %c0_i32 = arith.constant 0 : i32
    %c0_i32_0 = arith.constant 0 : i32
    %c0_i32_1 = arith.constant 0 : i32
    return %arg0, %c0_i32, %c0_i32_0 : i32, i32, i32
  }
  func.func @transform_7(%arg0: i32) -> (i32, i32) {
    %c0_i32 = arith.constant 0 : i32
    %c0_i32_0 = arith.constant 0 : i32
    return %c0_i32, %arg0 : i32, i32
  }
  func.func @transform_8(%arg0: i32) -> (i32, i32, i32) {
    %c0_i32 = arith.constant 0 : i32
    %c0_i32_0 = arith.constant 0 : i32
    %c0_i32_1 = arith.constant 0 : i32
    return %arg0, %c0_i32, %c0_i32_0 : i32, i32, i32
  }
  func.func @transform_9(%arg0: i32) -> (i32, i32, i32) {
    %c0_i32 = arith.constant 0 : i32
    %c0_i32_0 = arith.constant 0 : i32
    %c0_i32_1 = arith.constant 0 : i32
    return %arg0, %c0_i32, %c0_i32_0 : i32, i32, i32
  }
}

</mosaic_0001>

<bundles_post_ra>
// kernel: tpu_custom_call.1
= control target key start
LH: loop header
LB: loop body
LE: loop exit
PB: predicated region body
PF: predicated region fallthrough
CT: control target
= control target key end

     0   :  { %15 = vsyncpa [#allocation3], 0  ;;  %s449_s0 = inlined_call_operand.hbm [shape: bf16[36,128], index: 0, kind: input, shape index: {}]   ;;  %s450_s1 = inlined_call_operand.vmem [shape: bf16[8,36], index: 1, kind: input, shape index: {}]   ;;  %s451_s2 = inlined_call_operand.vmem [shape: bf16[4,128], index: 2, kind: input, shape index: {}]   ;;  %s452_s3 = inlined_call_operand.vmem [shape: bf16[8,4], index: 3, kind: input, shape index: {}]   ;;  %s453_s4 = inlined_call_operand.hbm [shape: bf16[8,128], index: 4, kind: output, shape index: {0}]   ;;  %s454_s5 = inlined_call_operand.vmem [shape: f32[1,8,1], index: 5, kind: output, shape index: {1}]   ;;  %s455_s6 = inlined_call_operand.vmem [shape: f32[1,8,1], index: 6, kind: output, shape index: {2}]   ;;  %s456_s7 = inlined_call_operand.hbm [shape: bf16[8,128], index: 7, kind: output, shape index: {3}]   ;;  %s457_s8 = inlined_call_operand.vmem [shape: f32[1,8,1], index: 8, kind: output, shape index: {4}]   ;;  %s458_s9 = inlined_call_operand.vmem [shape: f32[1,8,1], index: 9, kind: output, shape index: {5}]  }
   0x1   :  { %16 = vsyncpa [#allocation4], 0 }
   0x2   :  { %17 = vsyncpa [#allocation7], 0  ;;  %s335_s30 = smov [#allocation2]   ;;  %s263_s13 = scalar_lea.hbm %s449_s0, 320 }
   0x3   :  { %s23_s10 = sshll.u32 %s335_s30, 4  ;;  %p264_p0 = scmp.ne.s32.totalorder %s449_s0, %s263_s13  ;;  %s24_s10 = int_to_ptr.vmem [resolvable:$true] %s23_s10 }
   0x4   :  { %p267_p1 = scmp.lt.u32.totalorder %s263_s13, %s449_s0 }
   0x6   :  { %p269_p2 = pnand %p267_p1, %p264_p0 }
   0x8   :  { %272 = shalt.err (!%p269_p2)
}
   0x9   :  { %s273_s18 = scalar_lea.vmem %s24_s10, 320  ;;  %p278_p4 = scmp.lt.s32.totalorder %s24_s10, %s24_s10 }
   0xa   :  { %p274_p3 = scmp.ne.s32.totalorder %s24_s10, %s273_s18  ;;  %p279_p5 = scmp.lt.s32.totalorder %s273_s18, %s273_s18 }
   0xc   :  { %p280_p6 = por %p279_p5, %p278_p4 }
   0xe   :  { %p281_p7 = pnand %p280_p6, %p274_p3 }
  0x10   :  { %284 = shalt.err (!%p281_p7)
}
  0x11   :  { %s336_s19 = smov 64   ;;  %s337_s20 = smov 4  }
  0x12   :  { %29 = dma.hbm_to_vmem [thread:$0]  %s449_s0, 320, %s24_s10, [#allocation3], %s336_s19, %s336_s19, %s337_s20  }
  0x13   :  { %329 = dma.done.wait [#allocation3], 320  }
  0x14   :  { %330 = vsyncadd [#allocation3], 4294966976  ;;  %v338_v0 = vmov 0.0   ;;  %vm339_vm0 = vmmov 0   ;;  %v260_v1 = vld [vmem:[#allocation2] sm:$0xff]   ;;  %vm66_vm1 = vcmask 1041408  }
  0x15   :  { %237 = vmatprep.subr.bf16.mxu0 %v338_v0  ;;  %247 = vmatprep.subr.bf16.mxu1 %v338_v0  ;;  %v261_v2 = vld [vmem:[#allocation2 + $0x8] sm:$0xff]   ;;  %v119_v3 = vld [vmem:[%s451_s2] sm:$0x3]  ;;  %v262_v5 = vld [vmem:[#allocation2 + $0x10] ss:$0 sps:$4 sm:$0x33]  }
  0x16   :  { %249 = vmatprep.mubr.msk.bf16.mxu1 %vm339_vm0, %v338_v0  ;;  %243 = vmatprep.mubr.msk.bf16.mxu0 %vm339_vm0, %v338_v0  ;;  %v125_v4 = vsel %vm66_vm1, %v119_v3, 0  ;;  %v41_v6 = vld [vmem:[%s452_s3] sm:$0xf]  ;;  %vm120_vm2 = vcmask 31744   ;;  %v68_v7 = vsel %vm66_vm1, %v262_v5, 0  ;;  %vm62_vm3 = vcmask 293888  }
  0x17   :  { %238 = vmatpush3.bf16.msra.mxu0 %v260_v1  ;;  %248 = vmatpush3.bf16.msra.mxu1 %v125_v4  ;;  %v40_v8 = vld [vmem:[%s450_s1] sm:$0xf]  ;;  %s340_s1 = smov [#allocation5]   ;;  %s341_s3 = smov [#allocation6]  }
  0x18   :  { %239 = vmatprep.subr.bf16.mxu0 %v338_v0  ;;  %s187_s2 = sshll.u32 %s340_s1, 4  ;;  %s201_s28 = sshll.u32 %s341_s3, 4  ;;  %s188_s2 = int_to_ptr.vmem [resolvable:$true] %s187_s2  ;;  %s202_s28 = int_to_ptr.vmem [resolvable:$true] %s201_s28 }
  0x19   :  { %s285_s29 = scalar_lea.vmem %s188_s2, 64  ;;  %p290_p9 = scmp.lt.s32.totalorder %s188_s2, %s188_s2 }
  0x1a   :  { %250 = vmatmul.mubr.msk.bf16.vlgmr.msra.gmra.mrb[0].mxu1 %vm120_vm2, %v41_v6  ;;  %p286_p8 = scmp.ne.s32.totalorder %s188_s2, %s285_s29  ;;  %p291_p10 = scmp.lt.s32.totalorder %s285_s29, %s285_s29 }
  0x1b   :  { %240 = vmatpush3.bf16.msra.mxu0 %v261_v2 }
  0x1c   :  { %241 = vmatprep.subr.bf16.mxu0 %v338_v0  ;;  %p292_p11 = por %p291_p10, %p290_p9 }
  0x1e   :  { %p293_p12 = pnand %p292_p11, %p286_p8 }
  0x1f   :  { %242 = vmatpush3.bf16.msra.mxu0 %v68_v7 }
  0x22   :  { %244 = vmatmul.mubr.msk.bf16.vlgmr.msra.gmra.mrb[0].mxu0 %vm62_vm3, %v40_v8 }
  0xed   :  { %v161_v9 = vpop.f32.mrb[0].mxu1 }
  0xee   :  { %v167_v10 = vpack.c.bf16 %v161_v9, %v161_v9  ;;  %v251_v11 = vpop.f32.mrb[1].mxu1  ;;  %169 = vadd.xlane.f32.xlu1 %v161_v9  ;;  %v172_v12 = vmul.f32 %v161_v9, %v161_v9 }
  0xef   :  { %v164_v13 = vpop.f32.mrb[2].mxu1 }
  0xf0   :  { %168 = vst [vmem:[#allocation6] sm:$0xf] %v167_v10  ;;  %v252_v14 = vpop.f32.mrb[3].mxu1 }
  0xf2   :  { %173 = vadd.xlane.f32.xlu1 %v172_v12 }
  0xf5   :  { %v104_v15 = vpop.f32.mrb[0].mxu0 }
  0xf6   :  { %v110_v16 = vpack.c.bf16 %v104_v15, %v104_v15  ;;  %112 = vadd.xlane.f32.xlu0 %v104_v15  ;;  %v245_v17 = vpop.f32.mrb[1].mxu0  ;;  %v115_v20 = vmul.f32 %v104_v15, %v104_v15 }
  0xf7   :  { %v107_v18 = vpop.f32.mrb[2].mxu0 }
  0xf8   :  { %111 = vst [vmem:[#allocation5] sm:$0xf] %v110_v16  ;;  %v246_v19 = vpop.f32.mrb[3].mxu0 }
  0xfa   :  { %116 = vadd.xlane.f32.xlu0 %v115_v20 }
  0xfb   :  { %296 = shalt.err (!%p293_p12)
}
  0xfc   :  { %s297_s11 = scalar_lea.hbm %s453_s4, 64 }
  0xfd   :  { %p298_p13 = scmp.ne.s32.totalorder %s453_s4, %s297_s11  ;;  %p301_p0 = scmp.lt.u32.totalorder %s297_s11, %s453_s4 }
  0xff   :  { %p303_p1 = pnand %p301_p0, %p298_p13 }
 0x101   :  { %306 = shalt.err (!%p303_p1)
}
 0x102   :  { %190 = dma.vmem_to_hbm [thread:$0]  %s188_s2, 64, %s453_s4, [#allocation4]  }
 0x103   :  { %s307_s18 = scalar_lea.vmem %s202_s28, 64  ;;  %p312_p3 = scmp.lt.s32.totalorder %s202_s28, %s202_s28 }
 0x104   :  { %p308_p2 = scmp.ne.s32.totalorder %s202_s28, %s307_s18  ;;  %p313_p4 = scmp.lt.s32.totalorder %s307_s18, %s307_s18 }
 0x106   :  { %p314_p5 = por %p313_p4, %p312_p3 }
 0x108   :  { %p315_p6 = pnand %p314_p5, %p308_p2 }
 0x10a   :  { %318 = shalt.err (!%p315_p6)
}
 0x10b   :  { %s319_s21 = scalar_lea.hbm %s456_s7, 64 }
 0x10c   :  { %p320_p7 = scmp.ne.s32.totalorder %s456_s7, %s319_s21  ;;  %p323_p8 = scmp.lt.u32.totalorder %s319_s21, %s456_s7 }
 0x10e   :  { %p325_p9 = pnand %p323_p8, %p320_p7 }
 0x110   :  { %328 = shalt.err (!%p325_p9)
}
 0x111   :  { %204 = dma.vmem_to_hbm [thread:$0]  %s202_s28, 64, %s456_s7, [#allocation7]   ;;  %vm176_vm4 = vcmask 7168  }
 0x17b   :  { %v170_v21 = vpop.xlane.xlu1 %169 }
 0x17c   :  { %179 = vst.msk [vmem:[%s457_s8] sm:$0xff] %vm176_vm4, %v170_v21 }
 0x17f   :  { %v174_v22 = vpop.xlane.xlu1 %173 }
 0x180   :  { %180 = vst.msk [vmem:[%s458_s9] sm:$0xff] %vm176_vm4, %v174_v22 }
 0x183   :  { %v113_v23 = vpop.xlane.xlu0 %112 }
 0x184   :  { %177 = vst.msk [vmem:[%s454_s5] sm:$0xff] %vm176_vm4, %v113_v23 }
 0x187   :  { %v117_v24 = vpop.xlane.xlu0 %116 }
 0x188   :  { %178 = vst.msk [vmem:[%s455_s6] sm:$0xff] %vm176_vm4, %v117_v24 }
 0x189   :  { %331 = dma.done.wait [#allocation4], 64  }
 0x18a   :  { %332 = vsyncadd [#allocation4], 4294967232 }
 0x18b   :  { %333 = dma.done.wait [#allocation7], 64  }
 0x18c   :  { %334 = vsyncadd [#allocation7], 4294967232 }
 0x18d   :  { %223 = vsyncpa [#allocation3], 1 }
 0x18e   :  { %224 = vsyncpa [#allocation4], 1 }
 0x18f   :  { %225 = vsyncpa [#allocation7], 1 }

</bundles_post_ra>
